<compile_context>
chip_gen: v6e
topology: v6e:2x2x1
jax: 0.10.0
libtpu: 0.0.40
codegen_flags: <defaults>
</compile_context>

<pallas_src>
import jax
import jax.numpy as jnp
from jax.experimental import pallas as pl
from jax.experimental.pallas import tpu as pltpu

_LANE = 128
_SUBLANE = 8
_MAX_TM = 1024
_MAX_TN = 1024
_MAX_TK = 4096
_VMEM_TILE_BUDGET = 28 * 1024 * 1024   # target per-step tile footprint
_VMEM_LIMIT_BYTES = 48 * 1024 * 1024   # raised scoped VMEM limit (safe on v5e/v6e/v7x)


def _round_up(x, m):
    return ((x + m - 1) // m) * m


def _nbytes(dt):
    return jnp.dtype(dt).itemsize


# ---------------------------------------------------------------------------
# Kernels
# ---------------------------------------------------------------------------

def _linear_fullk_kernel(x_ref, w_ref, b_ref, o_ref):
    """Full-K tile: x (tm, Hp) @ w (Hp, tn) + b (1, tn) -> o (tm, tn)."""
    acc = jnp.dot(x_ref[...], w_ref[...], preferred_element_type=jnp.float32)
    o_ref[...] = (acc + b_ref[...].astype(jnp.float32)).astype(o_ref.dtype)


def _linear_splitk_kernel(x_ref, w_ref, b_ref, o_ref, acc_ref):
    """Split-K fallback: grid (Mi, Vj, Hk), K last, f32 VMEM accumulator."""
    k = pl.program_id(2)

    @pl.when(k == 0)
    def _():
        acc_ref[...] = jnp.zeros_like(acc_ref)

    acc_ref[...] += jnp.dot(x_ref[...], w_ref[...],
                            preferred_element_type=jnp.float32)

    @pl.when(k == pl.num_programs(2) - 1)
    def _():
        o_ref[...] = (acc_ref[...] + b_ref[...].astype(jnp.float32)
                      ).astype(o_ref.dtype)


# ---------------------------------------------------------------------------
# One-time parameter preparation (hoisted out of the forward pass)
# ---------------------------------------------------------------------------

def prepare_linear_params(weight, bias, *, compute_dtype=jnp.bfloat16,
                          vmem_tile_budget=_VMEM_TILE_BUDGET):
    """weight: (V, H) torch-Linear layout; bias: (V,).

    Transposes the weight once to (H, V), pads to the tile grid, casts to the
    compute dtype, and fixes the V/H tiling plan (tn, tk, full-K vs split-K).
    """
    weight = jnp.asarray(weight)
    bias = jnp.asarray(bias)
    V, H = weight.shape
    assert bias.shape == (V,)
    bw = _nbytes(compute_dtype)
    bx = bw

    w_budget = vmem_tile_budget // 2       # double-buffered W-tile share
    x_budget = vmem_tile_budget // 4       # minimal-X share used for planning

    H_128 = _round_up(H, _LANE)
    full_k = (2 * 128 * H_128 * bx <= x_budget
              and 2 * H_128 * _LANE * bw <= w_budget)

    if full_k:
        tk = H_128
    else:
        tk = min(_MAX_TK,
                 (w_budget // (2 * _LANE * bw)) // _LANE * _LANE,
                 (x_budget // (2 * 128 * bx)) // _LANE * _LANE)
        tk = max(_LANE, tk)

    tn = min(_MAX_TN,
             (w_budget // (2 * tk * bw)) // _LANE * _LANE,
             _round_up(V, _LANE))
    tn = max(_LANE, tn)

    H_p = _round_up(H, tk)
    V_p = _round_up(V, tn)

    # (V, H) -> (H, V): native MXU RHS layout; pad + cast ONCE.
    w_t = jnp.pad(weight.T, ((0, H_p - H), (0, V_p - V))).astype(compute_dtype)
    b2d = jnp.pad(bias.astype(jnp.float32), (0, V_p - V)).reshape(1, V_p)

    return dict(w=w_t, b=b2d, H=H, V=V, H_p=H_p, V_p=V_p, tn=tn, tk=tk,
                full_k=full_k, compute_dtype=compute_dtype,
                vmem_tile_budget=vmem_tile_budget)


def _choose_tm(M, params, out_dtype):
    """Pick tm that fits the VMEM budget and minimizes total HBM traffic."""
    tn, tk = params["tn"], params["tk"]
    H_p, V_p = params["H_p"], params["V_p"]
    full_k = params["full_k"]
    bx = _nbytes(params["compute_dtype"])
    bw = bx
    bo = _nbytes(out_dtype)
    budget = params["vmem_tile_budget"]

    tm_cap = min(_MAX_TM, _round_up(M, _SUBLANE))
    cands = sorted({c for c in range(_LANE, _MAX_TM + 1, _LANE) if c <= tm_cap}
                   | {tm_cap})
    gj = V_p // tn
    best = None
    for tm in cands:
        fp = (2 * tm * tk * bx + 2 * tk * tn * bw + 2 * tm * tn * bo
              + 2 * tn * 4)
        if not full_k:
            fp += tm * tn * 4                     # f32 accumulator scratch
        if fp > budget and tm != cands[0]:
            continue
        gi = -(-M // tm)
        m_p = gi * tm
        if full_k:
            # X read once (block-revisit across inner V axis), W read gi times.
            traffic = m_p * H_p * bx + gi * V_p * H_p * bw + m_p * V_p * bo
        else:
            traffic = (gj * m_p * H_p * bx + gi * V_p * H_p * bw
                       + m_p * V_p * bo)
        key = (traffic, -tm)
        if best is None or key < best[0]:
            best = (key, tm)
    return best[1]


# ---------------------------------------------------------------------------
# Forward pass
# ---------------------------------------------------------------------------

def linear_pallas(x2d, params, *, out_dtype=None):
    """x2d: (M, H) activations; params from prepare_linear_params -> (M, V)."""
    M, H = x2d.shape
    assert H == params["H"], (H, params["H"])
    V = params["V"]
    H_p, V_p = params["H_p"], params["V_p"]
    tn, tk = params["tn"], params["tk"]
    full_k = params["full_k"]
    compute_dtype = params["compute_dtype"]
    out_dtype = jnp.dtype(out_dtype or x2d.dtype)

    tm = _choose_tm(M, params, out_dtype)
    gi = -(-M // tm)
    M_p = gi * tm
    gj = V_p // tn

    # Per-call: only the activations are padded / cast (weights were prepped).
    if (M_p, H_p) != (M, H):
        x2d = jnp.pad(x2d, ((0, M_p - M), (0, H_p - H)))
    x2d = x2d.astype(compute_dtype)

    if full_k:
        grid = (gi, gj)
        in_specs = [
            # X tile held constant across the inner (V) axis -> DMA'd once per i.
            pl.BlockSpec((tm, H_p), lambda i, j: (i, 0)),
            pl.BlockSpec((H_p, tn), lambda i, j: (0, j)),   # (H, V) native layout
            pl.BlockSpec((1, tn), lambda i, j: (0, j)),     # bias
        ]
        out_specs = pl.BlockSpec((tm, tn), lambda i, j: (i, j))
        scratch_shapes = []
        kernel = _linear_fullk_kernel
        dim_sem = ("parallel", "parallel")
    else:
        # TODO(synk): split-K fallback only triggers for extremely large H.
        gk = H_p // tk
        grid = (gi, gj, gk)
        in_specs = [
            pl.BlockSpec((tm, tk), lambda i, j, k: (i, k)),
            pl.BlockSpec((tk, tn), lambda i, j, k: (k, j)),
            pl.BlockSpec((1, tn), lambda i, j, k: (0, j)),
        ]
        out_specs = pl.BlockSpec((tm, tn), lambda i, j, k: (i, j))
        scratch_shapes = [pltpu.VMEM((tm, tn), jnp.float32)]
        kernel = _linear_splitk_kernel
        dim_sem = ("parallel", "parallel", "arbitrary")

    out = pl.pallas_call(
        kernel,
        out_shape=jax.ShapeDtypeStruct((M_p, V_p), out_dtype),
        grid_spec=pltpu.PrefetchScalarGridSpec(
            num_scalar_prefetch=0,
            grid=grid,
            in_specs=in_specs,
            out_specs=out_specs,
            scratch_shapes=scratch_shapes,
        ),
        compiler_params=pltpu.CompilerParams(
            dimension_semantics=dim_sem,
            vmem_limit_bytes=_VMEM_LIMIT_BYTES,
        ),
    )(x2d, params["w"], params["b"])

    if (M_p, V_p) != (M, V):
        out = out[:M, :V]
    return out


def make_residual_stream_mlp(weight, bias, *, compute_dtype=jnp.bfloat16,
                             out_dtype=None):
    """Builds forward(hidden_states) with one-time parameter preparation."""
    params = prepare_linear_params(weight, bias, compute_dtype=compute_dtype)

    def forward(hidden_states):
        B, S, H = hidden_states.shape
        x2d = hidden_states.reshape(-1, H)       # matches torch .reshape(-1, H)
        logits = linear_pallas(x2d, params, out_dtype=out_dtype)
        return logits.reshape(B, S, -1)

    return forward


if __name__ == "__main__":
    # Small shapes consistent with the module's forward: (batch, seq, hidden) -> vocab
    batch, seq, hidden, vocab = 2, 8, 32, 128

    key = jax.random.PRNGKey(0)
    k_x, k_w, k_b = jax.random.split(key, 3)

    hidden_states = jax.random.normal(k_x, (batch, seq, hidden), dtype=jnp.float32)
    # Synthetic Linear(hidden, vocab) parameters: weight (V, H), bias (V,)
    weight = jax.random.normal(k_w, (vocab, hidden), dtype=jnp.float32) * 0.02
    bias = jax.random.normal(k_b, (vocab,), dtype=jnp.float32) * 0.02

    forward = make_residual_stream_mlp(weight, bias)   # bf16 compute, f32 out
    out = forward(hidden_states)
    jax.block_until_ready(out)

    # Cross-check against plain JAX reference (f32).
    ref = (hidden_states.reshape(-1, hidden) @ weight.T + bias).reshape(
        batch, seq, vocab
    )
    assert out.shape == (batch, seq, vocab)
    assert out.dtype == hidden_states.dtype
    # bf16 compute vs f32 reference -> slightly loosened tolerance.
    assert jnp.allclose(out, ref, atol=1e-2, rtol=1e-2), float(
        jnp.max(jnp.abs(out - ref)))

    print("KERNEL_OK")
</pallas_src>

<mosaic_0001>
module attributes {stable_mosaic.version = 11 : i64} {
  func.func @_linear_fullk_kernel(%arg0: i32, %arg1: i32, %arg2: memref<16x128xbf16, #tpu.memory_space<vmem>>, %arg3: memref<128x128xbf16, #tpu.memory_space<vmem>>, %arg4: memref<1x128xf32, #tpu.memory_space<vmem>>, %arg5: memref<16x128xf32, #tpu.memory_space<vmem>>) attributes {dimension_semantics = [#tpu.dimension_semantics<parallel>, #tpu.dimension_semantics<parallel>], iteration_bounds = array<i64: 1, 1>, scalar_prefetch = 0 : i64, scratch_operands = 0 : i64, tpu.core_type = #tpu.core_type<tc>, window_params = [{transform_indices = @transform_0, window_bounds = array<i64: 16, 128>}, {transform_indices = @transform_1, window_bounds = array<i64: 128, 128>}, {transform_indices = @transform_2, window_bounds = array<i64: 1, 128>}, {transform_indices = @transform_3, window_bounds = array<i64: 16, 128>}]} {
    %c0 = arith.constant 0 : index
    %c0_0 = arith.constant 0 : index
    %0 = vector.load %arg2[%c0, %c0_0] : memref<16x128xbf16, #tpu.memory_space<vmem>>, vector<16x128xbf16>
    %c0_1 = arith.constant 0 : index
    %c0_2 = arith.constant 0 : index
    %1 = vector.load %arg3[%c0_1, %c0_2] : memref<128x128xbf16, #tpu.memory_space<vmem>>, vector<128x128xbf16>
    %cst = arith.constant dense<0.000000e+00> : vector<16x128xf32>
    %2 = tpu.matmul %0, %1, %cst {dimension_numbers = #tpu.dot_dimension_numbers<[1], [0], [0], [1], [0, 0, 1, 1], [], []>} : vector<16x128xbf16>, vector<128x128xbf16>, vector<16x128xf32> -> vector<16x128xf32>
    %c0_3 = arith.constant 0 : index
    %c0_4 = arith.constant 0 : index
    %3 = vector.load %arg4[%c0_3, %c0_4] : memref<1x128xf32, #tpu.memory_space<vmem>>, vector<1x128xf32>
    %4 = vector.broadcast %3 : vector<1x128xf32> to vector<16x128xf32>
    %5 = arith.addf %2, %4 : vector<16x128xf32>
    %c0_5 = arith.constant 0 : index
    %c0_6 = arith.constant 0 : index
    %6 = vector.load %arg5[%c0_5, %c0_6] : memref<16x128xf32, #tpu.memory_space<vmem>>, vector<16x128xf32>
    tpu.vector_store %arg5[%c0_5, %c0_6], %5 {strides = array<i32>} : memref<16x128xf32, #tpu.memory_space<vmem>>, vector<16x128xf32>,
    return
  }
  func.func @transform_0(%arg0: i32, %arg1: i32) -> (i32, i32) {
    %c0_i32 = arith.constant 0 : i32
    %c0_i32_0 = arith.constant 0 : i32
    return %arg0, %c0_i32 : i32, i32
  }
  func.func @transform_1(%arg0: i32, %arg1: i32) -> (i32, i32) {
    %c0_i32 = arith.constant 0 : i32
    %c0_i32_0 = arith.constant 0 : i32
    return %c0_i32, %arg1 : i32, i32
  }
  func.func @transform_2(%arg0: i32, %arg1: i32) -> (i32, i32) {
    %c0_i32 = arith.constant 0 : i32
    %c0_i32_0 = arith.constant 0 : i32
    return %c0_i32, %arg1 : i32, i32
  }
  func.func @transform_3(%arg0: i32, %arg1: i32) -> (i32, i32) {
    %c0_i32 = arith.constant 0 : i32
    return %arg0, %arg1 : i32, i32
  }
}

</mosaic_0001>

<bundles_post_ra>
// kernel: tpu_custom_call.1
= control target key start
LH: loop header
LB: loop body
LE: loop exit
PB: predicated region body
PF: predicated region fallthrough
CT: control target
= control target key end

     0   :  { %8 = vsyncpa [#allocation3], 0  ;;  %s348_s0 = inlined_call_operand.hbm [shape: bf16[16,128], index: 0, kind: input, shape index: {}]   ;;  %s349_s1 = inlined_call_operand.hbm [shape: bf16[128,128], index: 1, kind: input, shape index: {}]   ;;  %s350_s2 = inlined_call_operand.vmem [shape: f32[1,128], index: 2, kind: input, shape index: {}]   ;;  %s351_s3 = inlined_call_operand.hbm [shape: f32[16,128], index: 3, kind: output, shape index: {}]  }
   0x1   :  { %9 = vsyncpa [#allocation6], 0 }
   0x2   :  { %10 = vsyncpa [#allocation4], 0  ;;  %s307_s12 = smov [#allocation2]  }
   0x3   :  { %s16_s13 = sshll.u32 %s307_s12, 4  ;;  %s17_s13 = int_to_ptr.vmem [resolvable:$true] %s16_s13 }
   0x4   :  { %s249_s14 = scalar_lea.vmem %s17_s13, 128  ;;  %p254_p1 = scmp.lt.s32.totalorder %s17_s13, %s17_s13 }
   0x5   :  { %p250_p0 = scmp.ne.s32.totalorder %s17_s13, %s249_s14  ;;  %p255_p2 = scmp.lt.s32.totalorder %s249_s14, %s249_s14 }
   0x7   :  { %p256_p3 = por %p255_p2, %p254_p1 }
   0x9   :  { %p257_p4 = pnand %p256_p3, %p250_p0 }
   0xb   :  { %260 = shalt.err (!%p257_p4)
}
   0xc   :  { %s308_s15 = smov 64   ;;  %s309_s16 = smov 4  }
   0xd   :  { %22 = dma.hbm_to_vmem [thread:$0]  %s348_s0, 128, %s17_s13, [#allocation3], %s308_s15, %s308_s15, %s309_s16  }
   0xe   :  { %s310_s19 = smov [#allocation5]  }
   0xf   :  { %s28_s20 = sshll.u32 %s310_s19, 4  ;;  %s29_s20 = int_to_ptr.vmem [resolvable:$true] %s28_s20 }
  0x10   :  { %s269_s21 = scalar_lea.vmem %s29_s20, 1024  ;;  %p274_p6 = scmp.lt.s32.totalorder %s29_s20, %s29_s20 }
  0x11   :  { %p270_p5 = scmp.ne.s32.totalorder %s29_s20, %s269_s21  ;;  %p275_p7 = scmp.lt.s32.totalorder %s269_s21, %s269_s21 }
  0x13   :  { %p276_p8 = por %p275_p7, %p274_p6 }
  0x15   :  { %p277_p9 = pnand %p276_p8, %p270_p5 }
  0x17   :  { %280 = shalt.err (!%p277_p9)
}
  0x18   :  { %34 = dma.hbm_to_vmem [thread:$0]  %s349_s1, 1024, %s29_s20, [#allocation6], %s308_s15, %s308_s15, %s309_s16  }
  0x19   :  { %301 = dma.done.wait [#allocation3], 128  }
  0x1a   :  { %302 = vsyncadd [#allocation3], 4294967168 }
  0x1b   :  { %303 = dma.done.wait [#allocation6], 1024  }
  0x1c   :  { %304 = vsyncadd [#allocation6], 4294966272  ;;  %v311_v0 = vmov 0.0   ;;  %vm312_vm0 = vmmov 0   ;;  %v232_v1 = vld [vmem:[#allocation5 + $0x38] sm:$0xff]   ;;  %v233_v2 = vld [vmem:[#allocation5 + $0x30] sm:$0xff]  }
  0x1d   :  { %203 = vmatprep.subr.bf16.mxu0 %v311_v0  ;;  %219 = vmatprep.mubr.msk.bf16.mxu0 %vm312_vm0, %v311_v0  ;;  %v234_v3 = vld [vmem:[#allocation5 + $0x28] sm:$0xff]   ;;  %v235_v4 = vld [vmem:[#allocation5 + $0x20] sm:$0xff]   ;;  %v236_v5 = vld [vmem:[#allocation5 + $0x18] sm:$0xff]   ;;  %s313_s24 = smov [#allocation7]  }
  0x1e   :  { %204 = vmatpush3.bf16.msra.mxu0 %v232_v1  ;;  %v237_v6 = vld [vmem:[#allocation5 + $0x10] sm:$0xff]   ;;  %v238_v7 = vld [vmem:[#allocation5 + $0x8] sm:$0xff]   ;;  %v239_v8 = vld [vmem:[#allocation5] sm:$0xff]   ;;  %s171_s25 = sshll.u32 %s313_s24, 4  ;;  %s172_s25 = int_to_ptr.vmem [resolvable:$true] %s171_s25 }
  0x1f   :  { %205 = vmatprep.subr.bf16.mxu0 %v311_v0  ;;  %v240_v9 = vld [vmem:[#allocation2] sm:$0xff]   ;;  %s281_s26 = scalar_lea.vmem %s172_s25, 256  ;;  %p286_p11 = scmp.lt.s32.totalorder %s172_s25, %s172_s25 }
  0x20   :  { %v184_v10 = vld [vmem:[%s350_s2] ss:$0 sm:$0xff]  ;;  %p282_p10 = scmp.ne.s32.totalorder %s172_s25, %s281_s26  ;;  %p287_p12 = scmp.lt.s32.totalorder %s281_s26, %s281_s26 }
  0x22   :  { %206 = vmatpush3.bf16.msra.mxu0 %v233_v2  ;;  %p288_p13 = por %p287_p12, %p286_p11 }
  0x23   :  { %207 = vmatprep.subr.bf16.mxu0 %v311_v0 }
  0x24   :  { %p289_p0 = pnand %p288_p13, %p282_p10 }
  0x26   :  { %208 = vmatpush3.bf16.msra.mxu0 %v234_v3 }
  0x27   :  { %209 = vmatprep.subr.bf16.mxu0 %v311_v0 }
  0x2a   :  { %210 = vmatpush3.bf16.msra.mxu0 %v235_v4 }
  0x2b   :  { %211 = vmatprep.subr.bf16.mxu0 %v311_v0 }
  0x2e   :  { %212 = vmatpush3.bf16.msra.mxu0 %v236_v5 }
  0x2f   :  { %213 = vmatprep.subr.bf16.mxu0 %v311_v0 }
  0x32   :  { %214 = vmatpush3.bf16.msra.mxu0 %v237_v6 }
  0x33   :  { %215 = vmatprep.subr.bf16.mxu0 %v311_v0 }
  0x36   :  { %216 = vmatpush3.bf16.msra.mxu0 %v238_v7 }
  0x37   :  { %217 = vmatprep.subr.bf16.mxu0 %v311_v0 }
  0x3a   :  { %218 = vmatpush3.bf16.msra.mxu0 %v239_v8 }
  0x3d   :  { %220 = vmatmul.mubr.bf16.vlgmr.msra.gmra.mxu0 %v240_v9 }
  0xfd   :  { %v157_v11 = vpop.f32.mrf.mxu0 }
  0xfe   :  { %v158_v12 = vadd.f32 %v184_v10, %v157_v11 }
  0xff   :  { %v221_v13 = vpop.f32.mrf.mxu0 }
 0x100   :  { %164 = vst [vmem:[#allocation7] sm:$0xff] %v158_v12 }
 0x101   :  { %v160_v14 = vpop.f32.mrf.mxu0 }
 0x102   :  { %v161_v15 = vadd.f32 %v184_v10, %v160_v14 }
 0x103   :  { %v222_v16 = vpop.f32.mrf.mxu0 }
 0x104   :  { %165 = vst [vmem:[#allocation7 + $0x8] sm:$0xff] %v161_v15 }
 0x105   :  { %292 = shalt.err (!%p289_p0)
}
 0x106   :  { %s314_s27 = smov 128   ;;  %s315_s2 = smov 8  }
 0x107   :  { %177 = dma.vmem_to_hbm [thread:$0]  %s172_s25, 256, %s351_s3, [#allocation4], %s314_s27, %s314_s27, %s315_s2  }
 0x108   :  { %305 = dma.done.wait [#allocation4], 256  }
 0x109   :  { %306 = vsyncadd [#allocation4], 4294967040 }
 0x10a   :  { %181 = vsyncpa [#allocation3], 1 }
 0x10b   :  { %182 = vsyncpa [#allocation6], 1 }
 0x10c   :  { %183 = vsyncpa [#allocation4], 1 }

</bundles_post_ra>
